<compile_context>
chip_gen: v7x
topology: tpu7x:2x2x1
jax: 0.10.0
libtpu: 0.0.40
codegen_flags: <defaults>
</compile_context>

<pallas_src>
import jax
import jax.numpy as jnp
from jax.experimental import pallas as pl
from jax.experimental.pallas import tpu as pltpu


def _round_up(x, m):
    return ((x + m - 1) // m) * m


def _mlp_kernel(x_ref, w1_ref, b1_ref, w2_ref, b2_ref, w3_ref, b3_ref, o_ref):
    # One batch tile of x is resident in VMEM; all (tiny) weights are resident whole.
    x = x_ref[...].astype(jnp.float32)

    h1 = jnp.dot(x, w1_ref[...], preferred_element_type=jnp.float32) + b1_ref[...]
    h1 = jnp.maximum(h1, 0.0)                                   # ReLU

    h2 = jnp.dot(h1, w2_ref[...], preferred_element_type=jnp.float32) + b2_ref[...]
    h2 = jnp.maximum(h2, 0.0)                                   # ReLU

    # Third layer has out_features == 1: skip the MXU (N=1 wastes the output width and
    # pays the result-FIFO drain) and use the otherwise-idle VPU/XLU slots instead.
    # w3_ref is pre-transposed host-side to (1, 10).
    raw = jnp.sum(h2 * w3_ref[...], axis=-1, keepdims=True)     # (bb, 1), lane 0 only

    # Relayout to the lane-dense output row FIRST, then do bias-add + sigmoid on full
    # 128-lane vregs (instead of bb/8 vregs with a single live lane).
    z = jnp.transpose(raw) + b3_ref[...]                        # (1, bb)
    # sigmoid = 1 / (1 + exp(-z)); exp and the approx reciprocal both run on the EUP.
    sig = pl.reciprocal(1.0 + jnp.exp(-z), approx=True)
    o_ref[...] = sig.astype(o_ref.dtype)


def pred_domain_layer(x, params, *, block_b=None, cast_input_to_bf16=False):
    """Fused MLP forward. x: (B, E). Returns (B, 1) float32."""
    w1, b1, w2, b2, w3, b3 = params
    B, E = x.shape

    if cast_input_to_bf16 and x.dtype == jnp.float32:
        # Halves HBM traffic on this bandwidth-bound kernel; kernel upcasts to f32.
        x = x.astype(jnp.bfloat16)

    elem = jnp.dtype(x.dtype).itemsize
    lane = 128

    # VMEM budget: leave headroom below physical capacity (48 MiB on v7x's 64 MiB,
    # 96 MiB on v5e/v6e's 128 MiB).
    try:
        vmem_cap = int(pltpu.get_tpu_info().vmem_capacity_bytes)
    except Exception:
        vmem_cap = 64 << 20
    vmem_ceiling = int(vmem_cap * 0.75)
    tile_budget = min(40 << 20, int(vmem_ceiling * 0.8))

    def tile_vmem(bb, nbuf):
        # x buffers (lane-padded) + lane-padded f32 activations/temporaries + output bufs.
        x_buf = nbuf * bb * _round_up(E, lane) * elem
        acts = 4 * bb * lane * 4
        out_buf = 2 * 8 * _round_up(bb, lane) * 4
        return x_buf + acts + out_buf + (1 << 20)   # +1 MiB slack (weights, internal)

    # ---- tile selection ----------------------------------------------------------
    if block_b is None:
        # Size the batch tile so each grid step moves ~2 MiB of x from HBM.
        bb_target = max(2048, min(16384, (2 << 20) // max(1, elem * E)))
    else:
        bb_target = block_b
    bb_target = _round_up(bb_target, 128)
    # Cap the target by the VMEM budget (assume 3 input buffers worst case).
    while tile_vmem(bb_target, 3) > tile_budget and bb_target > 256:
        bb_target = _round_up(bb_target // 2, 128)

    # Split large batches into an even number of >=2 tiles so both v7x TensorCores
    # get work (harmless on single-TC v5e/v6e).
    multi = (B > bb_target) or (B >= 2048)
    if not multi:
        bb = _round_up(B, 8)            # single tile, sublane-aligned (== full padded dim)
        num_tiles = 1
    else:
        num_tiles = pl.cdiv(B, bb_target)
        if num_tiles % 2:
            num_tiles += 1
        bb = _round_up(pl.cdiv(B, num_tiles), 128)   # lane-aligned output tile
    b_pad = num_tiles * bb

    if b_pad != B:
        x = jnp.pad(x, ((0, b_pad - B), (0, 0)))  # tail rows computed then sliced away

    # x tile spec; triple-buffer when there are enough steps for it to matter.
    if num_tiles >= 3:
        x_spec = pl.BlockSpec((bb, E), lambda i: (i, 0), pipeline_mode=pl.Buffered(3))
        nbuf = 3
    else:
        x_spec = pl.BlockSpec((bb, E), lambda i: (i, 0))
        nbuf = 2

    # Tiny full-array blocks for weights/biases (same block every grid step).
    full = lambda arr: pl.BlockSpec(arr.shape, lambda i: (0, 0))

    # Raise the scoped-VMEM limit whenever the tile footprint could exceed v5e's
    # 16 MiB default; never request more than ~75% of physical VMEM.
    vmem_est = tile_vmem(bb, nbuf)
    if vmem_est > (8 << 20):
        vmem_limit = int(min(max(2 * vmem_est, 16 << 20), vmem_ceiling))
    else:
        vmem_limit = None

    weight_bytes = sum(int(p.size) * 4 for p in (w1, b1, w2, b2, w3, b3))
    cost = pl.CostEstimate(
        flops=2 * B * E * 20 + 2 * B * 20 * 10 + 2 * B * 10,
        transcendentals=2 * B,                   # exp + reciprocal per row
        bytes_accessed=B * E * elem + B * 4 + weight_bytes,
    )

    out = pl.pallas_call(
        _mlp_kernel,
        out_shape=jax.ShapeDtypeStruct((1, b_pad), jnp.float32),
        grid_spec=pltpu.PrefetchScalarGridSpec(
            num_scalar_prefetch=0,
            grid=(num_tiles,),
            in_specs=[
                x_spec,                                  # x tile over batch
                full(w1), full(b1),
                full(w2), full(b2),
                full(w3), full(b3),
            ],
            out_specs=pl.BlockSpec((1, bb), lambda i: (0, i)),  # lane-dense output row
        ),
        compiler_params=pltpu.CompilerParams(
            dimension_semantics=("parallel",),   # megacore sharding on v7x
            vmem_limit_bytes=vmem_limit,
        ),
        cost_estimate=cost,
    )(x, w1, b1, w2, b2, w3, b3)

    return out[0, :B].reshape(B, 1)


def init_params(key, embedding_dim):
    """Deterministic synthetic init matching nn.Linear shapes (stored transposed).

    w1: (E,20), w2: (20,10), w3: (1,10)  [pre-transposed row], biases (1, out)."""
    k1, k2, k3, k4, k5, k6 = jax.random.split(key, 6)

    def linear_init(kw, kb, fan_in, fan_out):
        bound = 1.0 / jnp.sqrt(fan_in)
        w = jax.random.uniform(kw, (fan_in, fan_out), jnp.float32, -bound, bound)
        b = jax.random.uniform(kb, (1, fan_out), jnp.float32, -bound, bound)
        return w, b

    w1, b1 = linear_init(k1, k2, embedding_dim, 20)
    w2, b2 = linear_init(k3, k4, 20, 10)
    w3, b3 = linear_init(k5, k6, 10, 1)
    w3 = jnp.transpose(w3)              # store as (1, 10) so the kernel needs no relayout
    return (w1, b1, w2, b2, w3, b3)


def _reference(x, params):
    w1, b1, w2, b2, w3, b3 = params
    h1 = jnp.maximum(x @ w1 + b1, 0.0)
    h2 = jnp.maximum(h1 @ w2 + b2, 0.0)
    return jax.nn.sigmoid(h2 @ jnp.transpose(w3) + b3)


if __name__ == "__main__":
    key = jax.random.PRNGKey(0)
    kx, kp, kx2 = jax.random.split(key, 3)

    embedding_dim = 32
    params = init_params(kp, embedding_dim)

    # Tolerance note: the kernel uses the EUP approximate reciprocal for the sigmoid
    # divide (~1e-4 max abs error on values in (0,1)), so compare with a loose atol.
    ATOL = 5e-3

    # Small single-tile case.
    x_small = jax.random.normal(kx, (8, embedding_dim), jnp.float32)
    out_small = jax.block_until_ready(pred_domain_layer(x_small, params))
    ref_small = _reference(x_small, params)
    assert out_small.shape == (8, 1)
    assert jnp.allclose(out_small, ref_small, atol=ATOL, rtol=1e-3), "mismatch (single tile)"

    # Multi-tile + padded-tail case (exercises lane-dense tiled output, even tile count,
    # Buffered(3) input pipelining and batch padding).
    x_tiled = jax.random.normal(kx2, (300, embedding_dim), jnp.float32)
    out_tiled = jax.block_until_ready(pred_domain_layer(x_tiled, params, block_b=128))
    ref_tiled = _reference(x_tiled, params)
    assert out_tiled.shape == (300, 1)
    assert jnp.allclose(out_tiled, ref_tiled, atol=ATOL, rtol=1e-3), "mismatch (multi tile)"

    print("KERNEL_OK")
</pallas_src>

<mosaic_0001>
module attributes {stable_mosaic.version = 11 : i64} {
  func.func @_mlp_kernel(%arg0: i32, %arg1: memref<8x32xf32, #tpu.memory_space<vmem>>, %arg2: memref<32x20xf32, #tpu.memory_space<vmem>>, %arg3: memref<1x20xf32, #tpu.memory_space<vmem>>, %arg4: memref<20x10xf32, #tpu.memory_space<vmem>>, %arg5: memref<1x10xf32, #tpu.memory_space<vmem>>, %arg6: memref<1x10xf32, #tpu.memory_space<vmem>>, %arg7: memref<1x1xf32, #tpu.memory_space<vmem>>, %arg8: memref<1x8xf32, #tpu.memory_space<vmem>>) attributes {dimension_semantics = [#tpu.dimension_semantics<parallel>], iteration_bounds = array<i64: 1>, scalar_prefetch = 0 : i64, scratch_operands = 0 : i64, tpu.core_type = #tpu.core_type<tc>, window_params = [{transform_indices = @transform_0, window_bounds = array<i64: 8, 32>}, {pipeline_mode = #tpu.pipeline_mode<synchronous>, transform_indices = @transform_1, window_bounds = array<i64: 32, 20>}, {pipeline_mode = #tpu.pipeline_mode<synchronous>, transform_indices = @transform_2, window_bounds = array<i64: 1, 20>}, {pipeline_mode = #tpu.pipeline_mode<synchronous>, transform_indices = @transform_3, window_bounds = array<i64: 20, 10>}, {pipeline_mode = #tpu.pipeline_mode<synchronous>, transform_indices = @transform_4, window_bounds = array<i64: 1, 10>}, {pipeline_mode = #tpu.pipeline_mode<synchronous>, transform_indices = @transform_5, window_bounds = array<i64: 1, 10>}, {pipeline_mode = #tpu.pipeline_mode<synchronous>, transform_indices = @transform_6, window_bounds = array<i64: 1, 1>}, {transform_indices = @transform_7, window_bounds = array<i64: 1, 8>}]} {
    %c0 = arith.constant 0 : index
    %c0_0 = arith.constant 0 : index
    %0 = vector.load %arg1[%c0, %c0_0] : memref<8x32xf32, #tpu.memory_space<vmem>>, vector<8x32xf32>
    %c0_1 = arith.constant 0 : index
    %c0_2 = arith.constant 0 : index
    %1 = vector.load %arg2[%c0_1, %c0_2] : memref<32x20xf32, #tpu.memory_space<vmem>>, vector<32x20xf32>
    %cst = arith.constant dense<0.000000e+00> : vector<8x20xf32>
    %2 = tpu.matmul %0, %1, %cst {dimension_numbers = #tpu.dot_dimension_numbers<[1], [0], [0], [1], [0, 0, 1, 1], [], []>} : vector<8x32xf32>, vector<32x20xf32>, vector<8x20xf32> -> vector<8x20xf32>
    %c0_3 = arith.constant 0 : index
    %c0_4 = arith.constant 0 : index
    %3 = vector.load %arg3[%c0_3, %c0_4] : memref<1x20xf32, #tpu.memory_space<vmem>>, vector<1x20xf32>
    %4 = vector.broadcast %3 : vector<1x20xf32> to vector<8x20xf32>
    %5 = arith.addf %2, %4 : vector<8x20xf32>
    %cst_5 = arith.constant 0.000000e+00 : f32
    %6 = vector.broadcast %cst_5 : f32 to vector<8x20xf32>
    %7 = arith.maximumf %5, %6 : vector<8x20xf32>
    %c0_6 = arith.constant 0 : index
    %c0_7 = arith.constant 0 : index
    %8 = vector.load %arg4[%c0_6, %c0_7] : memref<20x10xf32, #tpu.memory_space<vmem>>, vector<20x10xf32>
    %cst_8 = arith.constant dense<0.000000e+00> : vector<8x10xf32>
    %9 = tpu.matmul %7, %8, %cst_8 {dimension_numbers = #tpu.dot_dimension_numbers<[1], [0], [0], [1], [0, 0, 1, 1], [], []>} : vector<8x20xf32>, vector<20x10xf32>, vector<8x10xf32> -> vector<8x10xf32>
    %c0_9 = arith.constant 0 : index
    %c0_10 = arith.constant 0 : index
    %10 = vector.load %arg5[%c0_9, %c0_10] : memref<1x10xf32, #tpu.memory_space<vmem>>, vector<1x10xf32>
    %11 = vector.broadcast %10 : vector<1x10xf32> to vector<8x10xf32>
    %12 = arith.addf %9, %11 : vector<8x10xf32>
    %cst_11 = arith.constant 0.000000e+00 : f32
    %13 = vector.broadcast %cst_11 : f32 to vector<8x10xf32>
    %14 = arith.maximumf %12, %13 : vector<8x10xf32>
    %c0_12 = arith.constant 0 : index
    %c0_13 = arith.constant 0 : index
    %15 = vector.load %arg6[%c0_12, %c0_13] : memref<1x10xf32, #tpu.memory_space<vmem>>, vector<1x10xf32>
    %16 = vector.broadcast %15 : vector<1x10xf32> to vector<8x10xf32>
    %17 = arith.mulf %14, %16 : vector<8x10xf32>
    %cst_14 = arith.constant dense<0.000000e+00> : vector<8xf32>
    %18 = vector.multi_reduction <add>, %17, %cst_14 [1] : vector<8x10xf32> to vector<8xf32>
    %19 = vector.shape_cast %18 : vector<8xf32> to vector<8x1xf32>
    %20 = tpu.transpose %19, [1, 0] : vector<8x1xf32> -> vector<1x8xf32>
    %c0_15 = arith.constant 0 : index
    %c0_16 = arith.constant 0 : index
    %21 = vector.load %arg7[%c0_15, %c0_16] : memref<1x1xf32, #tpu.memory_space<vmem>>, vector<1x1xf32>
    %22 = vector.broadcast %21 : vector<1x1xf32> to vector<1x8xf32>
    %23 = arith.addf %20, %22 : vector<1x8xf32>
    %cst_17 = arith.constant 0.000000e+00 : f32
    %24 = vector.broadcast %cst_17 : f32 to vector<1x8xf32>
    %25 = arith.subf %24, %23 : vector<1x8xf32>
    %26 = math.exp %25 : vector<1x8xf32>
    %cst_18 = arith.constant 1.000000e+00 : f32
    %27 = vector.broadcast %cst_18 : f32 to vector<1x8xf32>
    %28 = arith.addf %27, %26 : vector<1x8xf32>
    %29 = tpu.reciprocal %28 {approx = true} : vector<1x8xf32> -> vector<1x8xf32>
    %c0_19 = arith.constant 0 : index
    %c0_20 = arith.constant 0 : index
    %30 = vector.load %arg8[%c0_19, %c0_20] : memref<1x8xf32, #tpu.memory_space<vmem>>, vector<1x8xf32>
    tpu.vector_store %arg8[%c0_19, %c0_20], %29 {strides = array<i32>} : memref<1x8xf32, #tpu.memory_space<vmem>>, vector<1x8xf32>,
    return
  }
  func.func @transform_0(%arg0: i32) -> (i32, i32) {
    %c0_i32 = arith.constant 0 : i32
    %c0_i32_0 = arith.constant 0 : i32
    return %arg0, %c0_i32 : i32, i32
  }
  func.func @transform_1(%arg0: i32) -> (i32, i32) {
    %c0_i32 = arith.constant 0 : i32
    %c0_i32_0 = arith.constant 0 : i32
    %c0_i32_1 = arith.constant 0 : i32
    return %c0_i32, %c0_i32_0 : i32, i32
  }
  func.func @transform_2(%arg0: i32) -> (i32, i32) {
    %c0_i32 = arith.constant 0 : i32
    %c0_i32_0 = arith.constant 0 : i32
    %c0_i32_1 = arith.constant 0 : i32
    return %c0_i32, %c0_i32_0 : i32, i32
  }
  func.func @transform_3(%arg0: i32) -> (i32, i32) {
    %c0_i32 = arith.constant 0 : i32
    %c0_i32_0 = arith.constant 0 : i32
    %c0_i32_1 = arith.constant 0 : i32
    return %c0_i32, %c0_i32_0 : i32, i32
  }
  func.func @transform_4(%arg0: i32) -> (i32, i32) {
    %c0_i32 = arith.constant 0 : i32
    %c0_i32_0 = arith.constant 0 : i32
    %c0_i32_1 = arith.constant 0 : i32
    return %c0_i32, %c0_i32_0 : i32, i32
  }
  func.func @transform_5(%arg0: i32) -> (i32, i32) {
    %c0_i32 = arith.constant 0 : i32
    %c0_i32_0 = arith.constant 0 : i32
    %c0_i32_1 = arith.constant 0 : i32
    return %c0_i32, %c0_i32_0 : i32, i32
  }
  func.func @transform_6(%arg0: i32) -> (i32, i32) {
    %c0_i32 = arith.constant 0 : i32
    %c0_i32_0 = arith.constant 0 : i32
    %c0_i32_1 = arith.constant 0 : i32
    return %c0_i32, %c0_i32_0 : i32, i32
  }
  func.func @transform_7(%arg0: i32) -> (i32, i32) {
    %c0_i32 = arith.constant 0 : i32
    %c0_i32_0 = arith.constant 0 : i32
    return %c0_i32, %arg0 : i32, i32
  }
}

</mosaic_0001>

<bundles_post_ra>
// kernel: tpu_custom_call.1
= control target key start
LH: loop header
LB: loop body
LE: loop exit
PB: predicated region body
PF: predicated region fallthrough
CT: control target
= control target key end

     0   :  { %s452_s0 = inlined_call_operand.vmem [shape: f32[8,32], index: 0, kind: input, shape index: {}]   ;;  %s453_s1 = inlined_call_operand.vmem [shape: f32[32,20], index: 1, kind: input, shape index: {}]   ;;  %s454_s2 = inlined_call_operand.vmem [shape: f32[1,20], index: 2, kind: input, shape index: {}]   ;;  %s455_s3 = inlined_call_operand.vmem [shape: f32[20,10], index: 3, kind: input, shape index: {}]   ;;  %s456_s4 = inlined_call_operand.vmem [shape: f32[1,10], index: 4, kind: input, shape index: {}]   ;;  %s457_s5 = inlined_call_operand.vmem [shape: f32[1,10], index: 5, kind: input, shape index: {}]   ;;  %s458_s6 = inlined_call_operand.<no memory space> [shape: f32[1,1], index: 6, kind: input, shape index: {}]   ;;  %s459_s7 = inlined_call_operand.hbm [shape: f32[1,8], index: 7, kind: output, shape index: {}]  }
   0x1   :  { %v12_v0 = vstv %s458_s6 }
   0x2   :  { %13 = vst [vmem:[#allocation2] sm:$0x1] %v12_v0 }
   0x3   :  { %v30_v1 = vld [vmem:[%s453_s1] sm:$0xff]  ;;  %v31_v2 = vld [vmem:[%s453_s1 + $0x8] sm:$0xff]  ;;  %v32_v3 = vld [vmem:[%s453_s1 + $0x10] sm:$0xff]  ;;  %v359_v4 = vmov 0.0|0.0   ;;  %vm360_vm0 = vmmov 0   ;;  %v361_v7 = vmov 0.0  }
   0x4   :  { %316 = vmatprep.subr.bf16.mxu0 %v359_v4  ;;  %v317_v5 = vpack.c.bf16 %v31_v2, %v30_v1  ;;  %v33_v6 = vld [vmem:[%s453_s1 + $0x18] sm:$0xff]  ;;  %304 = vmatprep.mubr.msk.f32.mxu0 %vm360_vm0, %v361_v7 }
   0x5   :  { %322 = vmatprep.subr.bf16.mxu1 %v359_v4  ;;  %313 = vmatprep.mubr.msk.f32.mxu1 %vm360_vm0, %v361_v7 }
   0x6   :  { %14 = vsyncpa [#allocation4], 0  ;;  %318 = vmatpush3.bf16.msra.mxu0 %v317_v5  ;;  %v320_v8 = vpack.c.bf16 %v33_v6, %v32_v3  ;;  %v29_v9 = vld [vmem:[%s452_s0] sm:$0xff]  ;;  %vm41_vm1 = vcmask 261120   ;;  %v117_v11 = vld [vmem:[%s455_s3 + $0x8] sm:$0xff]  ;;  %vm130_vm2 = vcmask 1043456   ;;  %v255_v30 = vlaneseq }
   0x7   :  { %319 = vmatprep.subr.bf16.mxu0 %v359_v4  ;;  %v116_v10 = vld [vmem:[%s455_s3] sm:$0xff]  ;;  %v118_v13 = vld [vmem:[%s455_s3 + $0x10] sm:$0xf]  ;;  %vm126_vm3 = vcmask 162816   ;;  %v362_v19 = vmov 0   ;;  %vm213_vm4 = vcmask 80896  }
   0x8   :  { %v323_v12 = vpack.c.bf16 %v117_v11, %v116_v10  ;;  %v281_v14 = vld [vmem:[%s454_s2] ss:$0 sm:$0xff]  ;;  %330 = vset.pattern.permute.xlu0 %v362_v19  ;;  %v256_v31 = vshrl.u32 %v255_v30, 7  ;;  %s363_s2 = smov [#allocation3]   ;;  %vm265_vm5 = vcmask 57344  }
   0x9   :  { %v283_v20 = vld [vmem:[%s456_s4] ss:$0 sm:$0xff]  ;;  %s273_s4 = sshll.u32 %s363_s2, 4  ;;  %s274_s4 = int_to_ptr.vmem [resolvable:$true] %s273_s4 }
   0xa   :  { %321 = vmatpush3.bf16.msra.mxu0 %v320_v8  ;;  %324 = vmatpush3.bf16.msra.mxu1 %v323_v12  ;;  %v286_v24 = vld [vmem:[%s457_s5] ss:$0 sm:$0xff]  ;;  %v257_v32 = vsub.s32 0, %v256_v31  ;;  %s335_s5 = scalar_lea.vmem %s274_s4, 16  ;;  %s339_s21 = scalar_lea.vmem %s274_s4, 32 }
   0xb   :  { %311 = vmatprep.subr.mxu1 %v361_v7  ;;  %v249_v28 = vld [vmem:[#allocation2] sm:$0x1]  ;;  %p336_p0 = scmp.ne.s32.totalorder %s274_s4, %s335_s5  ;;  %p340_p1 = scmp.lt.s32.totalorder %s274_s4, %s274_s4 }
   0xc   :  { %p341_p2 = scmp.lt.s32.totalorder %s339_s21, %s335_s5 }
   0xd   :  { %305 = vmatmul.mubr.msk.f32.vlgmr.msra.gmra.mrb[0].mxu0 %vm41_vm1, %v29_v9 }
   0xe   :  { %312 = vmatpush3.msk.msra.mxu1 %vm130_vm2, %v118_v13  ;;  %p342_p3 = por %p341_p2, %p340_p1 }
  0x10   :  { %p343_p4 = pnand %p342_p3, %p336_p0 }
  0xe0   :  { %v111_v15 = vpop.f32.mrb[0].mxu0 }
  0xe1   :  { %v112_v16 = vadd.f32 %v281_v14, %v111_v15  ;;  %v306_v17 = vpop.f32.mrb[1].mxu0 }
  0xe3   :  { %v115_v18 = vmax.f32 %v112_v16, 0.0 }
  0xe5   :  { %314 = vmatmul.mubr.msk.f32.vlgmr.msra.gmra.mrb[0].mxu1 %vm126_vm3, %v115_v18 }
 0x1b8   :  { %v200_v21 = vpop.f32.mrb[0].mxu1 }
 0x1b9   :  { %v201_v22 = vadd.f32 %v283_v20, %v200_v21  ;;  %v315_v23 = vpop.f32.mrb[1].mxu1 }
 0x1bb   :  { %v204_v25 = vmax.f32 %v201_v22, 0.0 }
 0x1bd   :  { %v212_v26 = vmul.f32 %v286_v24, %v204_v25 }
 0x1bf   :  { %v214_v27 = vsel %vm213_vm4, %v212_v26, 0.0 }
 0x1c0   :  { %215 = vadd.xlane.f32.xlu0 %v214_v27 }
 0x1d6   :  { %252 = vperm.xlu0 %330, %v249_v28  }
 0x24d   :  { %v216_v29 = vpop.xlane.xlu0 %215 }
 0x24e   :  { %217 = vxpose.xlu1.b32.start.end [1/1] (short) (narrow) %v216_v29, 8 }
 0x255   :  { %v253_v33 = vpop.permute.xlu0 %252 }
 0x256   :  { %v258_v34 = vrot.slane %v253_v33, %v257_v32 }
 0x2ce   :  { %v233_v35 = vpop.trf.xlu1 }
 0x2cf   :  { %v259_v36 = vadd.f32 %v258_v34, %v233_v35 }
 0x2d1   :  { %v260_v37 = vsub.f32 0.0, %v259_v36 }
 0x2d3   :  { %v261_v38 = vmul.f32 1.442695, %v260_v37 }
 0x2d5   :  { %331 = vpow2.f32 %v261_v38 }
 0x2df   :  { %v332_v39 = vpop.eup %331 }
 0x2e0   :  { %v263_v40 = vadd.f32 1.0, %v332_v39 }
 0x2e2   :  { %333 = vrcp.f32 %v263_v40 }
 0x2ec   :  { %v334_v41 = vpop.eup %333 }
 0x2ed   :  { %266 = vst.msk [vmem:[#allocation3] sm:$0x1] %vm265_vm5, %v334_v41 }
 0x2ee   :  { %346 = shalt.err (!%p343_p4)
}
 0x2ef   :  { %s347_s24 = scalar_lea.hbm %s459_s7, 16 }
 0x2f0   :  { %p348_p5 = scmp.ne.s32.totalorder %s459_s7, %s347_s24  ;;  %p351_p6 = scmp.lt.u32.totalorder %s347_s24, %s459_s7 }
 0x2f2   :  { %p353_p7 = pnand %p351_p6, %p348_p5 }
 0x2f4   :  { %356 = shalt.err (!%p353_p7)
}
 0x2f5   :  { %276 = dma.vmem_to_hbm [thread:$0]  %s274_s4, 16, %s459_s7, [#allocation4]  }
 0x2f6   :  { %357 = dma.done.wait [#allocation4], 16  }
 0x2f7   :  { %358 = vsyncadd [#allocation4], 4294967280 }
 0x2f8   :  { %280 = vsyncpa [#allocation4], 1 }

</bundles_post_ra>
